<compile_context>
chip_gen: v7x
topology: tpu7x:2x2x1
jax: 0.10.0
libtpu: 0.0.40
codegen_flags: <defaults>
</compile_context>

<pallas_src>
import functools
import math

import jax
import jax.numpy as jnp
from jax.experimental import pallas as pl
from jax.experimental.pallas import tpu as pltpu


def _round_up(x, m):
    return ((x + m - 1) // m) * m


def _cdiv(a, b):
    return (a + b - 1) // b


_TARGET_BLOCK_BYTES = 2 * 1024 * 1024   # ~2 MiB x-blocks amortize per-step overhead
_MAX_PACKED_LANES = 2048                # cap on g*F for the lane-packed path
_MAX_TF_LANES = 8192                    # full-F blocks up to this many lanes
_MIN_PARALLEL_STEPS = 4                 # >= 2 grid steps per v7x TensorCore


def _pick_row_tile(n_rows, row_bytes):
    """Rows per block: ~2 MiB blocks, but keep >= 4 parallel steps when possible."""
    cap = max(8, (_TARGET_BLOCK_BYTES // max(row_bytes, 1)) // 8 * 8)
    balanced = max(8, _round_up(_cdiv(n_rows, _MIN_PARALLEL_STEPS), 8))
    return min(cap, balanced, _round_up(n_rows, 8))


# ----------------------------------------------------------------------------
# Kernels
# ----------------------------------------------------------------------------
def _repulsion_rows_kernel(x_ref, elog_ref, e_ref, o_ref, acc_ref, *,
                           f_total, tf):
    """General row-major path.

    Grid = (N tiles, F tiles).  x block (tn, tf), params (1, tf), output
    (tn, 1).  A (tn, 1) f32 scratch accumulates partial sums over the F axis
    (F axis is last and 'arbitrary'; output block is resident across it).
    """
    k = pl.program_id(1)
    nk = pl.num_programs(1)

    @pl.when(k == 0)
    def _():
        acc_ref[...] = jnp.zeros_like(acc_ref)

    x = x_ref[...].astype(jnp.float32)            # (tn, tf)
    elog = elog_ref[...]                          # (1, tf) = e * log(sigma)
    e = e_ref[...]                                # (1, tf) = exponent
    term = jnp.exp(elog - e * jnp.log(x))         # (sigma/x)^e: 1 log + 1 exp

    if f_total % tf != 0:
        # Ragged last feature block: zero the garbage lanes so they cannot
        # pollute the per-row sums of valid examples.
        rem = f_total % tf
        lane = jax.lax.broadcasted_iota(jnp.int32, term.shape, 1)
        limit = jnp.where(k == nk - 1, rem, tf)
        term = jnp.where(lane < limit, term, 0.0)

    acc_ref[...] += jnp.sum(term, axis=1, keepdims=True)

    @pl.when(k == nk - 1)
    def _():
        o_ref[...] = acc_ref[...].astype(o_ref.dtype)


def _repulsion_packed_kernel(x_ref, elog_ref, e_ref, sel_ref, o_ref):
    """Lane-packed small-F path.

    Each x-block row holds g examples back-to-back on a dense lane axis
    (g*F lanes, multiple of 128).  Params are the F-periodic rows tiled to
    width g*F.  The per-example segment sums are a tiny (g*F, g) 0/1 matmul
    on the otherwise idle MXU (HIGHEST precision keeps the f32 sums exact).
    """
    x = x_ref[...].astype(jnp.float32)
    term = jnp.exp(elog_ref[...] - e_ref[...] * jnp.log(x))   # (tn, g*F)
    o_ref[...] = jnp.dot(
        term, sel_ref[...],
        preferred_element_type=jnp.float32,
        precision=jax.lax.Precision.HIGHEST,
    ).astype(o_ref.dtype)


# ----------------------------------------------------------------------------
# Wrapper paths
# ----------------------------------------------------------------------------
def _repulsion_packed(in_feat, elog, e, g, block_rows):
    n, f = in_feat.shape
    lanes = g * f                      # = lcm(F, 128), multiple of 128
    rows = n // g
    x2 = in_feat.reshape(rows, lanes)                    # zero-copy reshape
    elog_row = jnp.tile(elog, g).reshape(1, lanes)
    e_row = jnp.tile(e, g).reshape(1, lanes)
    sel = (jnp.arange(lanes, dtype=jnp.int32)[:, None] // f
           == jnp.arange(g, dtype=jnp.int32)[None, :]).astype(jnp.float32)

    tn = (_round_up(block_rows, 8) if block_rows is not None
          else _pick_row_tile(rows, lanes * 4))

    out = pl.pallas_call(
        _repulsion_packed_kernel,
        out_shape=jax.ShapeDtypeStruct((rows, g), in_feat.dtype),
        grid_spec=pltpu.PrefetchScalarGridSpec(
            num_scalar_prefetch=0,
            grid=(_cdiv(rows, tn),),
            in_specs=[
                pl.BlockSpec((tn, lanes), lambda i: (i, 0)),   # packed examples
                pl.BlockSpec((1, lanes), lambda i: (0, 0)),    # e*log(sigma)
                pl.BlockSpec((1, lanes), lambda i: (0, 0)),    # exponent
                pl.BlockSpec((lanes, g), lambda i: (0, 0)),    # segment-sum matrix
            ],
            out_specs=pl.BlockSpec((tn, g), lambda i: (i, 0)),
        ),
        compiler_params=pltpu.CompilerParams(
            dimension_semantics=("parallel",)),
    )(x2, elog_row, e_row, sel)
    return out.reshape(n, 1)                             # zero-copy reshape


def _repulsion_rows(in_feat, elog, e, block_rows, block_feats):
    n, f = in_feat.shape
    if block_feats is not None:
        tf = block_feats
        if tf != f:
            assert tf % 128 == 0, "block_feats must be a multiple of 128 or == F"
    elif f <= _MAX_TF_LANES:
        tf = f                                   # single F block (common case)
    else:
        tf = _MAX_TF_LANES                       # multiple of 128
    nfb = _cdiv(f, tf)

    tn = (_round_up(block_rows, 8) if block_rows is not None
          else _pick_row_tile(n, tf * 4))

    elog_row = elog.reshape(1, f)
    e_row = e.reshape(1, f)

    kernel = functools.partial(_repulsion_rows_kernel, f_total=f, tf=tf)
    return pl.pallas_call(
        kernel,
        out_shape=jax.ShapeDtypeStruct((n, 1), in_feat.dtype),
        grid_spec=pltpu.PrefetchScalarGridSpec(
            num_scalar_prefetch=0,
            grid=(_cdiv(n, tn), nfb),
            in_specs=[
                pl.BlockSpec((tn, tf), lambda i, k: (i, k)),   # examples tile
                pl.BlockSpec((1, tf), lambda i, k: (0, k)),    # e*log(sigma)
                pl.BlockSpec((1, tf), lambda i, k: (0, k)),    # exponent
            ],
            out_specs=pl.BlockSpec((tn, 1), lambda i, k: (i, 0)),
            scratch_shapes=[pltpu.VMEM((tn, 1), jnp.float32)],
        ),
        compiler_params=pltpu.CompilerParams(
            dimension_semantics=("parallel", "arbitrary")),
    )(in_feat, elog_row, e_row)


@functools.partial(jax.jit, static_argnames=("block_rows", "block_feats"))
def repulsion_energy(in_feat, repulsion_parameters, *, block_rows=None,
                     block_feats=None):
    """Pallas forward of RepulsionLayer_L.

    in_feat: (N, F) positive pairwise distances.
    repulsion_parameters: (2, F) with row0 = sqrt(ex_vol), row1 = sqrt(exp).
    Returns energy (N, 1).
    """
    n, f = in_feat.shape
    p0 = repulsion_parameters[0, :].astype(jnp.float32)
    p1 = repulsion_parameters[1, :].astype(jnp.float32)
    e = p1 * p1                                   # exponent (>= 0)
    elog = e * jnp.log(p0 * p0)                   # e * log(sigma), sigma = p0^2

    g = 128 // math.gcd(f, 128)                   # examples packed per lane row
    if (block_feats is None and g > 1 and n % g == 0
            and g * f <= _MAX_PACKED_LANES):
        return _repulsion_packed(in_feat, elog, e, g, block_rows)
    return _repulsion_rows(in_feat, elog, e, block_rows, block_feats)


# ----------------------------------------------------------------------------
# Parameter construction (mirrors RepulsionLayer_L.__init__) and reference
# ----------------------------------------------------------------------------
def build_repulsion_parameters(num_features):
    """(2, F) buffer of [sqrt(ex_vol); sqrt(exp)], as in the PyTorch module."""
    interaction_parameters = [
        {"ex_vol": 0.8 + 0.02 * (i % 10), "exp": 6.0}
        for i in range(num_features)
    ]
    cols = [
        jnp.sqrt(jnp.array([[d["ex_vol"]], [d["exp"]]], dtype=jnp.float32))
        for d in interaction_parameters
    ]
    return jnp.concatenate(cols, axis=1)          # (2, F)


def reference_energy(in_feat, repulsion_parameters):
    """Pure-JAX mirror of the PyTorch forward."""
    n = in_feat.shape[0]
    sigma = repulsion_parameters[0, :] ** 2
    e = repulsion_parameters[1, :] ** 2
    return jnp.sum((sigma / in_feat) ** e, axis=1).reshape(n, 1)


if __name__ == "__main__":
    key = jax.random.PRNGKey(0)
    k1, k2, k3, k4 = jax.random.split(key, 4)

    def _check(x, params, **kw):
        out = jax.block_until_ready(repulsion_energy(x, params, **kw))
        ref = reference_energy(x, params)
        assert out.shape == (x.shape[0], 1)
        assert jnp.allclose(out, ref, rtol=1e-4, atol=1e-4), (
            float(jnp.max(jnp.abs(out - ref))))

    # Case 1: tiny F -> lane-packed path (g=8, 128 dense lanes, MXU segment sum).
    x1 = jax.random.uniform(k1, (256, 16), jnp.float32, minval=1.0, maxval=2.0)
    _check(x1, build_repulsion_parameters(16))

    # Case 2: F=160 -> lane-packed path (g=4, 640 dense lanes), ragged row block.
    x2 = jax.random.uniform(k2, (100, 160), jnp.float32, minval=1.0, maxval=2.0)
    _check(x2, build_repulsion_parameters(160))

    # Case 3: N not divisible by g -> row-major path, single F block, ragged N.
    x3 = jax.random.uniform(k3, (101, 160), jnp.float32, minval=1.0, maxval=2.0)
    _check(x3, build_repulsion_parameters(160))

    # Case 4: force the multi-F-block accumulator path (ragged last F block,
    # in-kernel lane mask) with an explicit 128-lane feature tile.
    x4 = jax.random.uniform(k4, (64, 300), jnp.float32, minval=1.0, maxval=2.0)
    _check(x4, build_repulsion_parameters(300), block_feats=128)

    print("KERNEL_OK")
</pallas_src>

<mosaic_0001>
module attributes {stable_mosaic.version = 11 : i64} {
  func.func @_repulsion_packed_kernel(%arg0: i32, %arg1: memref<8x128xf32, #tpu.memory_space<vmem>>, %arg2: memref<1x128xf32, #tpu.memory_space<vmem>>, %arg3: memref<1x128xf32, #tpu.memory_space<vmem>>, %arg4: memref<128x8xf32, #tpu.memory_space<vmem>>, %arg5: memref<8x8xf32, #tpu.memory_space<vmem>>) attributes {dimension_semantics = [#tpu.dimension_semantics<parallel>], iteration_bounds = array<i64: 4>, scalar_prefetch = 0 : i64, scratch_operands = 0 : i64, tpu.core_type = #tpu.core_type<tc>, window_params = [{transform_indices = @transform_0, window_bounds = array<i64: 8, 128>}, {pipeline_mode = #tpu.pipeline_mode<synchronous>, transform_indices = @transform_1, window_bounds = array<i64: 1, 128>}, {pipeline_mode = #tpu.pipeline_mode<synchronous>, transform_indices = @transform_2, window_bounds = array<i64: 1, 128>}, {pipeline_mode = #tpu.pipeline_mode<synchronous>, transform_indices = @transform_3, window_bounds = array<i64: 128, 8>}, {transform_indices = @transform_4, window_bounds = array<i64: 8, 8>}]} {
    %c0 = arith.constant 0 : index
    %c0_0 = arith.constant 0 : index
    %0 = vector.load %arg1[%c0, %c0_0] : memref<8x128xf32, #tpu.memory_space<vmem>>, vector<8x128xf32>
    %c0_1 = arith.constant 0 : index
    %c0_2 = arith.constant 0 : index
    %1 = vector.load %arg2[%c0_1, %c0_2] : memref<1x128xf32, #tpu.memory_space<vmem>>, vector<1x128xf32>
    %c0_3 = arith.constant 0 : index
    %c0_4 = arith.constant 0 : index
    %2 = vector.load %arg3[%c0_3, %c0_4] : memref<1x128xf32, #tpu.memory_space<vmem>>, vector<1x128xf32>
    %3 = math.log %0 : vector<8x128xf32>
    %4 = vector.broadcast %2 : vector<1x128xf32> to vector<8x128xf32>
    %5 = arith.mulf %4, %3 : vector<8x128xf32>
    %6 = vector.broadcast %1 : vector<1x128xf32> to vector<8x128xf32>
    %7 = arith.subf %6, %5 : vector<8x128xf32>
    %8 = math.exp %7 : vector<8x128xf32>
    %c0_5 = arith.constant 0 : index
    %c0_6 = arith.constant 0 : index
    %9 = vector.load %arg4[%c0_5, %c0_6] : memref<128x8xf32, #tpu.memory_space<vmem>>, vector<128x8xf32>
    %cst = arith.constant dense<0.000000e+00> : vector<8x8xf32>
    %10 = tpu.matmul %8, %9, %cst {dimension_numbers = #tpu.dot_dimension_numbers<[1], [0], [0], [1], [0, 0, 1, 1], [], []>, precision = #tpu.contract_precision<fp32>} : vector<8x128xf32>, vector<128x8xf32>, vector<8x8xf32> -> vector<8x8xf32>
    %c0_7 = arith.constant 0 : index
    %c0_8 = arith.constant 0 : index
    %11 = vector.load %arg5[%c0_7, %c0_8] : memref<8x8xf32, #tpu.memory_space<vmem>>, vector<8x8xf32>
    tpu.vector_store %arg5[%c0_7, %c0_8], %10 {strides = array<i32>} : memref<8x8xf32, #tpu.memory_space<vmem>>, vector<8x8xf32>,
    return
  }
  func.func @transform_0(%arg0: i32) -> (i32, i32) {
    %c0_i32 = arith.constant 0 : i32
    %c0_i32_0 = arith.constant 0 : i32
    return %arg0, %c0_i32 : i32, i32
  }
  func.func @transform_1(%arg0: i32) -> (i32, i32) {
    %c0_i32 = arith.constant 0 : i32
    %c0_i32_0 = arith.constant 0 : i32
    %c0_i32_1 = arith.constant 0 : i32
    return %c0_i32, %c0_i32_0 : i32, i32
  }
  func.func @transform_2(%arg0: i32) -> (i32, i32) {
    %c0_i32 = arith.constant 0 : i32
    %c0_i32_0 = arith.constant 0 : i32
    %c0_i32_1 = arith.constant 0 : i32
    return %c0_i32, %c0_i32_0 : i32, i32
  }
  func.func @transform_3(%arg0: i32) -> (i32, i32) {
    %c0_i32 = arith.constant 0 : i32
    %c0_i32_0 = arith.constant 0 : i32
    %c0_i32_1 = arith.constant 0 : i32
    return %c0_i32, %c0_i32_0 : i32, i32
  }
  func.func @transform_4(%arg0: i32) -> (i32, i32) {
    %c0_i32 = arith.constant 0 : i32
    %c0_i32_0 = arith.constant 0 : i32
    return %arg0, %c0_i32 : i32, i32
  }
}

</mosaic_0001>

<bundles_post_ra>
// kernel: tile.13
= control target key start
LH: loop header
LB: loop body
LE: loop exit
PB: predicated region body
PF: predicated region fallthrough
CT: control target
= control target key end

     0   :  { %s22_s0 = inlined_call_operand.vmem [shape: f32[16], index: 0, kind: input, shape index: {}]   ;;  %s23_s1 = inlined_call_operand.vmem [shape: f32[8,16], index: 1, kind: output, shape index: {}]  }
   0x1   :  { %v4_v0 = vld [vmem:[%s22_s0] ss:$0 sm:$0xff] }
   0x2   :  { %5 = vst [vmem:[%s23_s1] sm:$0xff] %v4_v0 }

// kernel: tile.14
= control target key start
LH: loop header
LB: loop body
LE: loop exit
PB: predicated region body
PF: predicated region fallthrough
CT: control target
= control target key end

     0   :  { %s67_s10 = smov 112   ;;  %s68_s11 = smov 80   ;;  %vm3_vm0 = vcmask 130048   ;;  %vm9_vm1 = vcmask 1048448   ;;  %vm15_vm2 = vcmask 917248   ;;  %vm21_vm3 = vcmask 786048   ;;  %s111_s0 = inlined_call_operand.vmem [shape: f32[8,16], index: 0, kind: input, shape index: {}]   ;;  %s112_s1 = inlined_call_operand.vmem [shape: f32[1,128], index: 1, kind: output, shape index: {}]  }
   0x1   :  { %v53_v0 = vld [vmem:[%s111_s0 + $0x7] sm:$0x1]   ;;  %v55_v1 = vld [vmem:[%s111_s0 + $0x5] sm:$0x1]   ;;  %v54_v2 = vld [vmem:[%s111_s0 + $0x6] sm:$0x1]  }
   0x2   :  { %7 = vrot.lane.b32.xlu0 %v53_v0, %s67_s10  ;;  %19 = vrot.lane.b32.xlu1 %v55_v1, %s68_s11  ;;  %v56_v3 = vld [vmem:[%s111_s0 + $0x4] sm:$0x1]   ;;  %v2_v4 = vld [vmem:[%s111_s0] sm:$0x1]   ;;  %s69_s18 = smov 96   ;;  %s70_s19 = smov 64  }
   0x3   :  { %4 = vst.msk [vmem:[#allocation0] sm:$0x1] %vm3_vm0, %v2_v4   ;;  %v57_v5 = vld [vmem:[%s111_s0 + $0x3] sm:$0x1]   ;;  %v58_v6 = vld [vmem:[%s111_s0 + $0x2] sm:$0x1]  }
   0x4   :  { %s71_s24 = smov 48   ;;  %s72_s25 = smov 32   ;;  %v59_v7 = vld [vmem:[%s111_s0 + $0x1] sm:$0x1]   ;;  %vm27_vm4 = vcmask 654848   ;;  %vm33_vm5 = vcmask 523648  }
   0x5   :  { %s73_s0 = smov 16   ;;  %vm39_vm6 = vcmask 392448   ;;  %vm45_vm7 = vcmask 261248  }
   0x6   :  { %13 = vrot.lane.b32.xlu0 %v54_v2, %s69_s18  ;;  %25 = vrot.lane.b32.xlu1 %v56_v3, %s70_s19 }
   0xa   :  { %31 = vrot.lane.b32.xlu0 %v57_v5, %s71_s24  ;;  %37 = vrot.lane.b32.xlu1 %v58_v6, %s72_s25 }
   0xe   :  { %43 = vrot.lane.b32.xlu0 %v59_v7, %s73_s0 }
  0x74   :  { %v8_v8 = vpop.permute.xlu0 %7   ;;  %v20_v9 = vpop.permute.xlu1 %19  }
  0x75   :  { %10 = vst.msk [vmem:[#allocation0] sm:$0x1] %vm9_vm1, %v8_v8  }
  0x78   :  { %v14_v10 = vpop.permute.xlu0 %13   ;;  %v26_v11 = vpop.permute.xlu1 %25  }
  0x79   :  { %16 = vst.msk [vmem:[#allocation0] sm:$0x1] %vm15_vm2, %v14_v10  }
  0x7a   :  { %22 = vst.msk [vmem:[#allocation0] sm:$0x1] %vm21_vm3, %v20_v9  }
  0x7b   :  { %28 = vst.msk [vmem:[#allocation0] sm:$0x1] %vm27_vm4, %v26_v11  }
  0x7c   :  { %v32_v12 = vpop.permute.xlu0 %31   ;;  %v38_v13 = vpop.permute.xlu1 %37  }
  0x7d   :  { %34 = vst.msk [vmem:[#allocation0] sm:$0x1] %vm33_vm5, %v32_v12  }
  0x7e   :  { %40 = vst.msk [vmem:[#allocation0] sm:$0x1] %vm39_vm6, %v38_v13  }
  0x80   :  { %v44_v14 = vpop.permute.xlu0 %43  }
  0x81   :  { %46 = vst.msk [vmem:[#allocation0] sm:$0x1] %vm45_vm7, %v44_v14  }
  0x88   :  { %v50_v15 = vld [vmem:[#allocation0] sm:$0x1] }
  0x89   :  { %52 = vst [vmem:[%s112_s1] sm:$0x1] %v50_v15 }

// kernel: repulsion_energy.1
= control target key start
LH: loop header
LB: loop body
LE: loop exit
PB: predicated region body
PF: predicated region fallthrough
CT: control target
= control target key end

     0   :  { %s1453_s15 = smov 0   ;;  %s1850_s0 = inlined_call_operand.vmem [shape: f32[32,128], index: 0, kind: input, shape index: {}]   ;;  %s1851_s1 = inlined_call_operand.vmem [shape: f32[1,128], index: 1, kind: input, shape index: {}]   ;;  %s1852_s2 = inlined_call_operand.vmem [shape: f32[1,128], index: 2, kind: input, shape index: {}]   ;;  %s1853_s3 = inlined_call_operand.vmem [shape: f32[128,8], index: 3, kind: input, shape index: {}]   ;;  %s1854_s4 = inlined_call_operand.vmem [shape: f32[32,8], index: 4, kind: output, shape index: {}]  }
   0x1 LB: > { %s926_s16 = sadd.s32 4294967295, %s1423_s15   ;;  %p930_p0 = scmp.ge.s32.totalorder %s1423_s15, 1  ;;  %s1423_s15 = sphi %s1453_s15, %s14_s15  }
   0x2   : > { %p161_p1 = scmp.lt.s32.totalorder %s1423_s15, 5 }
   0x4   : > { %p162_p2 = pnand %p930_p0, %p161_p1 }
   0x5   : > { %v1464_v0 = vld [vmem:[%s1853_s3] sm:$0xff] (!%p162_p2)  ;;  %v1469_v1 = vld [vmem:[%s1853_s3 + $0x8] sm:$0xff] (!%p162_p2)  ;;  %v1474_v2 = vld [vmem:[%s1853_s3 + $0x10] sm:$0xff] (!%p162_p2)  ;;  %v1425_v3 = vmov (!%p162_p2), 0.0|0.0   ;;  %vm1426_vm0 = vmmov (!%p162_p2), 0   ;;  %v1427_v11 = vmov (!%p162_p2), 0.0  }
   0x6   : > { %165 = sbr.rel (%p162_p2) target bundleno = 336 (0x150), region = 36  ;;  %1321 = vmatprep.subr.bf16.mxu0 (!%p162_p2), %v1425_v3  ;;  %v231_v4 = vand.u32 (!%p162_p2), 4294901760, %v1464_v0  ;;  %v234_v5 = vand.u32 (!%p162_p2), 4294901760, %v1469_v1  ;;  %1249 = vmatprep.subr.bf16.mxu1 (!%p162_p2), %v1425_v3  ;;  %v1483_v6 = vld [vmem:[%s1853_s3 + $0x18] sm:$0xff] (!%p162_p2)  ;;  %v237_v7 = vand.u32 (!%p162_p2), 4294901760, %v1474_v2  ;;  %v1490_v9 = vld [vmem:[%s1853_s3 + $0x20] sm:$0xff] (!%p162_p2) }
   0x7   : > { %v240_v8 = vand.u32 (!%p162_p2), 4294901760, %v1483_v6  ;;  %v1495_v10 = vld [vmem:[%s1853_s3 + $0x28] sm:$0xff] (!%p162_p2)  ;;  %1176 = vmatprep.mubr.msk.f32.mxu0 (!%p162_p2), %vm1426_vm0, %v1427_v11  ;;  %1071 = vmatprep.mubr.msk.f32.mxu1 (!%p162_p2), %vm1426_vm0, %v1427_v11  ;;  %p185_p3 = scmp.lt.s32.totalorder (!%p162_p2), %s926_s16, 3  ;;  %v243_v14 = vand.u32 (!%p162_p2), 4294901760, %v1490_v9  ;;  %v1524_v16 = vld [vmem:[%s1853_s3 + $0x30] sm:$0xff] (!%p162_p2)  ;;  %v1529_v17 = vld [vmem:[%s1853_s3 + $0x38] sm:$0xff] (!%p162_p2) }
   0x8   : > { %v1505_v12 = vpack.c.bf16 (!%p162_p2), %v234_v5, %v231_v4  ;;  %v246_v15 = vand.u32 (!%p162_p2), 4294901760, %v1495_v10  ;;  %v249_v19 = vand.u32 (!%p162_p2), 4294901760, %v1524_v16  ;;  %v252_v20 = vand.u32 (!%p162_p2), 4294901760, %v1529_v17  ;;  %v1552_v22 = vld [vmem:[%s1853_s3 + $0x40] sm:$0xff] (!%p162_p2)  ;;  %v1557_v23 = vld [vmem:[%s1853_s3 + $0x48] sm:$0xff] (!%p162_p2)  ;;  %v1574_v27 = vld [vmem:[%s1853_s3 + $0x50] sm:$0xff] (!%p162_p2) }
   0x9   : > { %v1513_v13 = vpack.c.bf16 (!%p162_p2), %v240_v8, %v237_v7  ;;  %v255_v25 = vand.u32 (!%p162_p2), 4294901760, %v1552_v22  ;;  %v258_v26 = vand.u32 (!%p162_p2), 4294901760, %v1557_v23  ;;  %v1579_v28 = vld [vmem:[%s1853_s3 + $0x58] sm:$0xff] (!%p162_p2)  ;;  %v261_v30 = vand.u32 (!%p162_p2), 4294901760, %v1574_v27  ;;  %v1596_v32 = vld [vmem:[%s1853_s3 + $0x60] sm:$0xff] (!%p162_p2)  ;;  %v1601_v33 = vld [vmem:[%s1853_s3 + $0x68] sm:$0xff] (!%p162_p2) }
   0xa   : > { %1323 = vmatpush3.bf16.msra.mxu0 (!%p162_p2), %v1505_v12  ;;  %1251 = vmatpush3.bf16.msra.mxu1 (!%p162_p2), %v1505_v12  ;;  %v1543_v18 = vpack.c.bf16 (!%p162_p2), %v246_v15, %v243_v14  ;;  %v1565_v24 = vpack.c.bf16 (!%p162_p2), %v252_v20, %v249_v19  ;;  %v264_v31 = vand.u32 (!%p162_p2), 4294901760, %v1579_v28  ;;  %v933_v35 = vld [vmem:[%s1852_s2] ss:$0 sm:$0xff] (!%p162_p2)  ;;  %v267_v37 = vand.u32 (!%p162_p2), 4294901760, %v1596_v32  ;;  %v1621_v40 = vld [vmem:[%s1853_s3 + $0x70] sm:$0xff] (!%p162_p2)  ;;  %v1626_v41 = vld [vmem:[%s1853_s3 + $0x78] sm:$0xff] (!%p162_p2) }
   0xb   : > { %1324 = vmatprep.subr.bf16.mxu0 (!%p162_p2), %v1425_v3  ;;  %1252 = vmatprep.subr.bf16.mxu1 (!%p162_p2), %v1425_v3  ;;  %v1587_v29 = vpack.c.bf16 (!%p162_p2), %v258_v26, %v255_v25  ;;  %v270_v38 = vand.u32 (!%p162_p2), 4294901760, %v1601_v33  ;;  %v934_v42 = vld [vmem:[%s1851_s1] ss:$0 sm:$0xff] (!%p162_p2)  ;;  %v273_v45 = vand.u32 (!%p162_p2), 4294901760, %v1621_v40  ;;  %v276_v46 = vand.u32 (!%p162_p2), 4294901760, %v1626_v41 }
   0xc   : > { %v1612_v36 = vpack.c.bf16 (!%p162_p2), %v264_v31, %v261_v30  ;;  %v1656_v50 = vsub.f32 (!%p162_p2), %v1464_v0, %v231_v4  ;;  %v1661_v51 = vsub.f32 (!%p162_p2), %v1469_v1, %v234_v5  ;;  %v1668_v52 = vsub.f32 (!%p162_p2), %v1474_v2, %v237_v7 }
   0xd   : > { %s1856_s16 = smov (!%p185_p3, %s926_s16), 3  ;;  %v1637_v44 = vpack.c.bf16 %v270_v38, %v267_v37  ;;  %v1649_v49 = vpack.c.bf16 %v276_v46, %v273_v45  ;;  %v1675_v53 = vsub.f32 %v1483_v6, %v240_v8  ;;  %v1682_v56 = vsub.f32 %v1490_v9, %v243_v14 }
   0xe   : > { %s931_s7 = sshll.u32 %s1856_s16, 3  ;;  %1326 = vmatpush3.bf16.msra.mxu0 %v1513_v13  ;;  %1254 = vmatpush3.bf16.msra.mxu1 %v1513_v13  ;;  %v324_v54 = vand.u32 4294901760, %v1656_v50  ;;  %v331_v55 = vand.u32 4294901760, %v1661_v51  ;;  %v338_v57 = vand.u32 4294901760, %v1668_v52  ;;  %v1688_v59 = vsub.f32 %v1495_v10, %v246_v15 }
   0xf   : > { %s188_s10 = scalar_lea.vmem %s1850_s0, %s931_s7  ;;  %1327 = vmatprep.subr.bf16.mxu0 %v1425_v3  ;;  %1255 = vmatprep.subr.bf16.mxu1 %v1425_v3  ;;  %v345_v62 = vand.u32 4294901760, %v1675_v53  ;;  %v1698_v0 = vsub.f32 %v1524_v16, %v249_v19  ;;  %v1703_v1 = vsub.f32 %v1529_v17, %v252_v20  ;;  %v352_v6 = vand.u32 4294901760, %v1682_v56 }
  0x10   : > { %v193_v21 = vld [vmem:[%s188_s10] sm:$0xff]  ;;  %v325_v60 = vsub.f32 %v1656_v50, %v324_v54  ;;  %v332_v61 = vsub.f32 %v1661_v51, %v331_v55  ;;  %v1346_v4 = vpack.c.bf16 %v331_v55, %v324_v54  ;;  %v339_v5 = vsub.f32 %v1668_v52, %v338_v57  ;;  %s192_s10 = scalar_lea.vmem %s1854_s4, %s931_s7 }
  0x11   : > { %1413 = vlog2.f32 %v193_v21  ;;  %v346_v9 = vsub.f32 %v1675_v53, %v345_v62  ;;  %v359_v10 = vand.u32 4294901760, %v1688_v59  ;;  %v1716_v15 = vsub.f32 %v1552_v22, %v255_v25 }
  0x12   : > { %1329 = vmatpush3.bf16.msra.mxu0 %v1543_v18  ;;  %1257 = vmatpush3.bf16.msra.mxu1 %v1543_v18  ;;  %v326_v7 = vand.u32 4294901760, %v325_v60  ;;  %v333_v8 = vand.u32 4294901760, %v332_v61  ;;  %v1721_v16 = vsub.f32 %v1557_v23, %v258_v26  ;;  %v366_v17 = vand.u32 4294901760, %v1698_v0 }
  0x13   : > { %1330 = vmatprep.subr.bf16.mxu0 %v1425_v3  ;;  %1258 = vmatprep.subr.bf16.mxu1 %v1425_v3  ;;  %v1349_v20 = vpack.c.bf16 %v345_v62, %v338_v57  ;;  %v340_v21 = vand.u32 4294901760, %v339_v5  ;;  %v353_v22 = vsub.f32 %v1682_v56, %v352_v6  ;;  %v360_v25 = vsub.f32 %v1688_v59, %v359_v10 }
  0x14   : > { %v1734_v26 = vsub.f32 %v1574_v27, %v261_v30  ;;  %v387_v54 = vand.u32 4294901760, %v1721_v16  ;;  %v1755_v30 = vsub.f32 %v1601_v33, %v270_v38  ;;  %v1768_v33 = vsub.f32 %v1621_v40, %v273_v45 }
  0x15   : > { %v354_v57 = vand.u32 4294901760, %v353_v22  ;;  %v1773_v38 = vsub.f32 %v1626_v41, %v276_v46  ;;  %vm871_vm1 = vcmask 64512  }
  0x16   : > { %1332 = vmatpush3.bf16.msra.mxu0 %v1565_v24  ;;  %1260 = vmatpush3.bf16.msra.mxu1 %v1565_v24  ;;  %v388_v61 = vsub.f32 %v1721_v16, %v387_v54  ;;  %v394_v62 = vand.u32 4294901760, %v1734_v26  ;;  %v415_v40 = vand.u32 4294901760, %v1755_v30 }
  0x17   : > { %1333 = vmatprep.subr.bf16.mxu0 %v1425_v3  ;;  %1261 = vmatprep.subr.bf16.mxu1 %v1425_v3 }
  0x1a   : > { %1335 = vmatpush3.bf16.msra.mxu0 %v1587_v29  ;;  %1263 = vmatpush3.bf16.msra.mxu1 %v1587_v29 }
  0x1b   : > { %v1414_v34 = vpop.eup %1413  ;;  %1336 = vmatprep.subr.bf16.mxu0 %v1425_v3  ;;  %1264 = vmatprep.subr.bf16.mxu1 %v1425_v3 }
  0x1c   : > { %v197_v39 = vmul.f32 0.6931472, %v1414_v34  ;;  %v373_v34 = vand.u32 4294901760, %v1703_v1 }
  0x1e   : > { %v204_v43 = vmul.f32 %v933_v35, %v197_v39  ;;  %1338 = vmatpush3.bf16.msra.mxu0 %v1612_v36  ;;  %1266 = vmatpush3.bf16.msra.mxu1 %v1612_v36  ;;  %v1274_v35 = vpack.c.bf16 %v333_v8, %v326_v7  ;;  %v347_v39 = vand.u32 4294901760, %v346_v9  ;;  %v374_v27 = vsub.f32 %v1703_v1, %v373_v34 }
  0x1f   : > { %1339 = vmatprep.subr.bf16.mxu0 %v1425_v3  ;;  %1267 = vmatprep.subr.bf16.mxu1 %v1425_v3  ;;  %v389_v7 = vand.u32 4294901760, %v388_v61  ;;  %v395_v8 = vsub.f32 %v1734_v26, %v394_v62 }
  0x20   : > { %v211_v47 = vsub.f32 %v934_v42, %v204_v43  ;;  %v1739_v42 = vsub.f32 %v1579_v28, %v264_v31  ;;  %v1352_v43 = vpack.c.bf16 %v359_v10, %v352_v6  ;;  %v1277_v55 = vpack.c.bf16 %v347_v39, %v340_v21 }
  0x21   : > { %v1750_v28 = vsub.f32 %v1596_v32, %v267_v37  ;;  %v1355_v31 = vpack.c.bf16 %v373_v34, %v366_v17  ;;  %v375_v37 = vand.u32 4294901760, %v374_v27  ;;  %v396_v46 = vand.u32 4294901760, %v395_v8 }
  0x22   : > { %v212_v48 = vmul.f32 1.442695, %v211_v47  ;;  %1341 = vmatpush3.bf16.msra.mxu0 %v1637_v44  ;;  %1269 = vmatpush3.bf16.msra.mxu1 %v1637_v44  ;;  %v367_v47 = vsub.f32 %v1698_v0, %v366_v17  ;;  %v401_v5 = vand.u32 4294901760, %v1739_v42  ;;  %v416_v21 = vsub.f32 %v1755_v30, %v415_v40 }
  0x23   : > { %1342 = vmatprep.subr.bf16.mxu0 %v1425_v3  ;;  %1270 = vmatprep.subr.bf16.mxu1 %v1425_v3  ;;  %v408_v9 = vand.u32 4294901760, %v1750_v28  ;;  %v422_v34 = vand.u32 4294901760, %v1768_v33  ;;  %v1298_v27 = vpack.c.bf16 %v1661_v51, %v1656_v50 }
  0x24   : > { %1415 = vpow2.f32 %v212_v48  ;;  %v380_v48 = vand.u32 4294901760, %v1716_v15  ;;  %v368_v32 = vand.u32 4294901760, %v367_v47  ;;  %v402_v17 = vsub.f32 %v1739_v42, %v401_v5 }
  0x25   : > { %v1361_v45 = vpack.c.bf16 %v401_v5, %v394_v62  ;;  %v1364_v39 = vpack.c.bf16 %v415_v40, %v408_v9 }
  0x26   : > { %1344 = vmatpush3.bf16.msra.mxu0 %v1649_v49  ;;  %1272 = vmatpush3.bf16.msra.mxu1 %v1649_v49  ;;  %v381_v60 = vsub.f32 %v1716_v15, %v380_v48  ;;  %v1283_v10 = vpack.c.bf16 %v375_v37, %v368_v32 }
  0x27   : > { %1345 = vmatprep.subr.bf16.mxu0 %v1425_v3  ;;  %1273 = vmatprep.subr.bf16.mxu1 %v1425_v3 }
  0x28   : > { %v382_v6 = vand.u32 4294901760, %v381_v60 }
  0x2a   : > { %v1286_v41 = vpack.c.bf16 %v389_v7, %v382_v6 }
  0x2e   : > { %v1416_v58 = vpop.eup %1415 }
  0x2f   : > { %v1693_v63 = vand.u32 4294901760, %v1416_v58 }
  0x31   : > { %v1706_v2 = vsub.f32 %v1416_v58, %v1693_v63  ;;  %v361_v58 = vand.u32 4294901760, %v360_v25 }
  0x33   : > { %v313_v14 = vand.u32 4294901760, %v1706_v2 }
  0x35   : > { %1177 = vmatmul.mubr.f32.vlgmr.msra.gmra.mrb[0].mxu0 %v313_v14  ;;  %v314_v19 = vsub.f32 %v1706_v2, %v313_v14  ;;  %v1358_v14 = vpack.c.bf16 %v387_v54, %v380_v48 }
  0x36   : > { %1347 = vmatpush3.bf16.msra.mxu0 %v1346_v4  ;;  %1211 = vmatprep.mubr.msk.f32.mxu0 %vm1426_vm0, %v1427_v11  ;;  %v1280_v4 = vpack.c.bf16 %v361_v58, %v354_v57 }
  0x37   : > { %1348 = vmatprep.subr.bf16.mxu0 %v1425_v3  ;;  %v315_v23 = vand.u32 4294901760, %v314_v19  ;;  %v409_v19 = vsub.f32 %v1750_v28, %v408_v9 }
  0x39   : > { %1072 = vmatmul.mubr.f32.vlgmr.msra.gmra.mrb[0].mxu1 %v315_v23  ;;  %v410_v22 = vand.u32 4294901760, %v409_v19  ;;  %v417_v23 = vand.u32 4294901760, %v416_v21 }
  0x3a   : > { %1275 = vmatpush3.bf16.msra.mxu1 %v1274_v35  ;;  %1350 = vmatpush3.bf16.msra.mxu0 %v1349_v20  ;;  %v403_v20 = vand.u32 4294901760, %v402_v17  ;;  %v429_v35 = vand.u32 4294901760, %v1773_v38 }
  0x3b   : > { %1276 = vmatprep.subr.bf16.mxu1 %v1425_v3  ;;  %1351 = vmatprep.subr.bf16.mxu0 %v1425_v3  ;;  %v1292_v48 = vpack.c.bf16 %v417_v23, %v410_v22 }
  0x3c   : > { %1106 = vmatprep.mubr.msk.f32.mxu1 %vm1426_vm0, %v1427_v11  ;;  %v1289_v25 = vpack.c.bf16 %v403_v20, %v396_v46  ;;  %v430_v47 = vsub.f32 %v1773_v38, %v429_v35  ;;  %v1367_v54 = vpack.c.bf16 %v429_v35, %v422_v34 }
  0x3e   : > { %1278 = vmatpush3.bf16.msra.mxu1 %v1277_v55  ;;  %1353 = vmatpush3.bf16.msra.mxu0 %v1352_v43  ;;  %v423_v43 = vsub.f32 %v1768_v33, %v422_v34  ;;  %v431_v57 = vand.u32 4294901760, %v430_v47 }
  0x3f   : > { %1279 = vmatprep.subr.bf16.mxu1 %v1425_v3  ;;  %1354 = vmatprep.subr.bf16.mxu0 %v1425_v3 }
  0x40   : > { %v424_v55 = vand.u32 4294901760, %v423_v43 }
  0x42   : > { %1281 = vmatpush3.bf16.msra.mxu1 %v1280_v4  ;;  %1356 = vmatpush3.bf16.msra.mxu0 %v1355_v31  ;;  %v1295_v58 = vpack.c.bf16 %v431_v57, %v424_v55  ;;  %v1301_v31 = vpack.c.bf16 %v1675_v53, %v1668_v52 }
  0x43   : > { %1282 = vmatprep.subr.bf16.mxu1 %v1425_v3  ;;  %1357 = vmatprep.subr.bf16.mxu0 %v1425_v3 }
  0x46   : > { %1284 = vmatpush3.bf16.msra.mxu1 %v1283_v10  ;;  %1359 = vmatpush3.bf16.msra.mxu0 %v1358_v14 }
  0x47   : > { %1285 = vmatprep.subr.bf16.mxu1 %v1425_v3  ;;  %1360 = vmatprep.subr.bf16.mxu0 %v1425_v3 }
  0x4a   : > { %1287 = vmatpush3.bf16.msra.mxu1 %v1286_v41  ;;  %1362 = vmatpush3.bf16.msra.mxu0 %v1361_v45 }
  0x4b   : > { %1288 = vmatprep.subr.bf16.mxu1 %v1425_v3  ;;  %1363 = vmatprep.subr.bf16.mxu0 %v1425_v3 }
  0x4e   : > { %1290 = vmatpush3.bf16.msra.mxu1 %v1289_v25  ;;  %1365 = vmatpush3.bf16.msra.mxu0 %v1364_v39 }
  0x4f   : > { %1291 = vmatprep.subr.bf16.mxu1 %v1425_v3  ;;  %1366 = vmatprep.subr.bf16.mxu0 %v1425_v3 }
  0x52   : > { %1293 = vmatpush3.bf16.msra.mxu1 %v1292_v48  ;;  %1368 = vmatpush3.bf16.msra.mxu0 %v1367_v54 }
  0x53   : > { %1294 = vmatprep.subr.bf16.mxu1 %v1425_v3  ;;  %1369 = vmatprep.subr.bf16.mxu0 %v1425_v3 }
  0x55   : > { %1212 = vmatmul.mubr.f32.vlgmr.msra.gmra.mrb[0].mxu0 %v1693_v63 }
  0x56   : > { %1296 = vmatpush3.bf16.msra.mxu1 %v1295_v58  ;;  %1371 = vmatpush3.bf16.msra.mxu0 %v1505_v12  ;;  %v1304_v12 = vpack.c.bf16 %v1688_v59, %v1682_v56 }
  0x57   : > { %1297 = vmatprep.subr.bf16.mxu1 %v1425_v3  ;;  %1372 = vmatprep.subr.bf16.mxu0 %v1425_v3 }
  0x58   : > { %1246 = vmatprep.mubr.msk.f32.mxu0 %vm1426_vm0, %v1427_v11 }
  0x59   : > { %1107 = vmatmul.mubr.f32.vlgmr.msra.gmra.mrb[0].mxu1 %v1693_v63 }
  0x5a   : > { %1299 = vmatpush3.bf16.msra.mxu1 %v1298_v27  ;;  %1374 = vmatpush3.bf16.msra.mxu0 %v1513_v13  ;;  %v1307_v13 = vpack.c.bf16 %v1703_v1, %v1698_v0 }
  0x5b   : > { %1300 = vmatprep.subr.bf16.mxu1 %v1425_v3  ;;  %1375 = vmatprep.subr.bf16.mxu0 %v1425_v3 }
  0x5c   : > { %1141 = vmatprep.mubr.msk.f32.mxu1 %vm1426_vm0, %v1427_v11  ;;  %v1310_v11 = vpack.c.bf16 %v1721_v16, %v1716_v15 }
  0x5e   : > { %1302 = vmatpush3.bf16.msra.mxu1 %v1301_v31  ;;  %1377 = vmatpush3.bf16.msra.mxu0 %v1543_v18  ;;  %v1313_v18 = vpack.c.bf16 %v1739_v42, %v1734_v26 }
  0x5f   : > { %1303 = vmatprep.subr.bf16.mxu1 %v1425_v3  ;;  %1378 = vmatprep.subr.bf16.mxu0 %v1425_v3 }
  0x62   : > { %1305 = vmatpush3.bf16.msra.mxu1 %v1304_v12  ;;  %1380 = vmatpush3.bf16.msra.mxu0 %v1565_v24  ;;  %v1316_v24 = vpack.c.bf16 %v1755_v30, %v1750_v28 }
  0x63   : > { %1306 = vmatprep.subr.bf16.mxu1 %v1425_v3  ;;  %1381 = vmatprep.subr.bf16.mxu0 %v1425_v3 }
  0x66   : > { %1308 = vmatpush3.bf16.msra.mxu1 %v1307_v13  ;;  %1383 = vmatpush3.bf16.msra.mxu0 %v1587_v29  ;;  %v1319_v29 = vpack.c.bf16 %v1773_v38, %v1768_v33 }
  0x67   : > { %1309 = vmatprep.subr.bf16.mxu1 %v1425_v3  ;;  %1384 = vmatprep.subr.bf16.mxu0 %v1425_v3 }
  0x6a   : > { %1311 = vmatpush3.bf16.msra.mxu1 %v1310_v11  ;;  %1386 = vmatpush3.bf16.msra.mxu0 %v1612_v36 }
  0x6b   : > { %1312 = vmatprep.subr.bf16.mxu1 %v1425_v3  ;;  %1387 = vmatprep.subr.bf16.mxu0 %v1425_v3 }
  0x6e   : > { %1314 = vmatpush3.bf16.msra.mxu1 %v1313_v18  ;;  %1389 = vmatpush3.bf16.msra.mxu0 %v1637_v44 }
  0x6f   : > { %1315 = vmatprep.subr.bf16.mxu1 %v1425_v3  ;;  %1390 = vmatprep.subr.bf16.mxu0 %v1425_v3 }
  0x72   : > { %1317 = vmatpush3.bf16.msra.mxu1 %v1316_v24  ;;  %1392 = vmatpush3.bf16.msra.mxu0 %v1649_v49 }
  0x73   : > { %1318 = vmatprep.subr.bf16.mxu1 %v1425_v3 }
  0x75   : > { %1247 = vmatmul.mubr.f32.vlgmr.msra.gmra.mrb[0].mxu0 %v1693_v63 }
  0x76   : > { %1320 = vmatpush3.bf16.msra.mxu1 %v1319_v29 }
  0x79   : > { %1142 = vmatmul.mubr.f32.vlgmr.msra.gmra.mrb[0].mxu1 %v1706_v2 }
 0x148   : > { %v867_v36 = vpop.f32.mrb[0].mxu0 }
 0x149   : > { %v1248_v44 = vpop.f32.mrb[1].mxu0 }
 0x14c   : > { %v572_v50 = vpop.f32.mrb[0].mxu1 }
 0x14d   : > { %v1393_v49 = vadd.f32 %v867_v36, %v572_v50  ;;  %v1143_v51 = vpop.f32.mrb[1].mxu1 }
 0x14f   : > { %872 = vst.msk [vmem:[%s192_s10] sm:$0xff] %vm871_vm1, %v1393_v49 }
 0x150 PF: > { %s14_s15 = sadd.s32 1, %s1423_s15  }
 0x151   : > { %p11_p4 = scmp.ge.s32.totalorder %s14_s15, 6  }
 0x153   :  { %13 = sbr.rel (!%p11_p4) target bundleno = 1 (0x1), region = 66 }

</bundles_post_ra>
